<compile_context>
chip_gen: v5e
topology: v5e:2x2
jax: 0.10.0
libtpu: 0.0.40
codegen_flags: <defaults>
</compile_context>

<pallas_src>
import functools

import numpy as np
import jax
import jax.numpy as jnp
from jax.experimental import pallas as pl
from jax.experimental.pallas import tpu as pltpu

SNR = 10.0  # module __init__ argument (signal-to-noise ratio, dB)


def gaussian_noise_kernel(y_ref, z_ref, o_ref, *, snr):
    y = y_ref[...].astype(jnp.float32)
    n = y.shape[1]

    # torch.std(y, dim=1) is the unbiased estimator (ddof=1).
    # One-pass variance: (sum(y^2) - sum(y)^2 / n) / (n - 1).
    s1 = jnp.sum(y, axis=1, keepdims=True)
    s2 = jnp.sum(y * y, axis=1, keepdims=True)
    var = (s2 - s1 * s1 * np.float32(1.0 / n)) * np.float32(1.0 / (n - 1))
    var = jnp.maximum(var, 0.0)  # guard tiny negative from cancellation
    std = jnp.sqrt(var) * np.float32(10.0 ** (-snr / 20.0))  # (TB, 1)

    # noise = std * z, z ~ N(0, 1) precomputed outside the kernel.
    z = z_ref[...].astype(jnp.float32)
    o_ref[...] = (y + std * z).astype(o_ref.dtype)


def _pick_batch_tile(B, N):
    """Largest multiple-of-8 batch tile that keeps the pipeline in VMEM.

    Footprint per grid step: 3 f32 arrays (y, z, out) x 2 pipeline buffers.
    Budget ~24 MiB so it fits v7x's 64 MiB physical VMEM with headroom.
    """
    if B % 8 != 0:
        # Full-batch block satisfies the "equal to full array dim" layout rule.
        return B
    budget = 24 * 1024 * 1024
    per_row = 6 * N * 4
    tb = max(8, (budget // per_row) // 8 * 8)
    tb = min(tb, 1024)  # keep several grid steps for DMA/compute overlap
    return min(tb, B)


def gaussian_noise(y, key, snr=SNR):
    B, N = y.shape
    # Standard normal draws; scaled per-row inside the kernel.
    z = jax.random.normal(key, (B, N), dtype=jnp.float32)

    tb = _pick_batch_tile(B, N)
    kernel = functools.partial(gaussian_noise_kernel, snr=snr)

    return pl.pallas_call(
        kernel,
        out_shape=jax.ShapeDtypeStruct((B, N), y.dtype),
        grid_spec=pl.GridSpec(
            grid=(pl.cdiv(B, tb),),
            in_specs=[
                pl.BlockSpec((tb, N), lambda i: (i, 0)),  # y
                pl.BlockSpec((tb, N), lambda i: (i, 0)),  # z
            ],
            out_specs=pl.BlockSpec((tb, N), lambda i: (i, 0)),
        ),
        compiler_params=pltpu.CompilerParams(
            dimension_semantics=("parallel",),       # megacore: shard batch tiles
            vmem_limit_bytes=48 * 1024 * 1024,       # headroom on v5e/v6e, fits v7x
        ),
    )(y, z)
    # TODO(synk): N == 1 yields NaN std (division by n-1), matching torch.std.


if __name__ == "__main__":
    key = jax.random.PRNGKey(0)
    data_key, noise_key = jax.random.split(key)

    B, N = 8, 256
    y = 2.0 * jax.random.normal(data_key, (B, N), dtype=jnp.float32) + 1.0

    out = gaussian_noise(y, noise_key, snr=SNR)
    out = jax.block_until_ready(out)

    # Sanity checks: shape/dtype preserved, finite values, and the added noise
    # has roughly the expected per-row scale (std_row * 10^(-snr/20)).
    assert out.shape == y.shape and out.dtype == y.dtype
    assert bool(jnp.all(jnp.isfinite(out)))
    noise = np.asarray(out - y)
    expected = np.std(np.asarray(y), axis=1, ddof=1) * (10.0 ** (-SNR / 20.0))
    measured = np.std(noise, axis=1)
    assert np.all(measured < 4.0 * expected) and np.all(measured > 0.25 * expected)

    print("KERNEL_OK")
</pallas_src>

<mosaic_0001>
module attributes {stable_mosaic.version = 11 : i64} {
  func.func @gaussian_noise_kernel(%arg0: i32, %arg1: memref<8x256xf32, #tpu.memory_space<vmem>>, %arg2: memref<8x256xf32, #tpu.memory_space<vmem>>, %arg3: memref<8x256xf32, #tpu.memory_space<vmem>>) attributes {dimension_semantics = [#tpu.dimension_semantics<parallel>], iteration_bounds = array<i64: 1>, scalar_prefetch = 0 : i64, scratch_operands = 0 : i64, tpu.core_type = #tpu.core_type<tc>, window_params = [{transform_indices = @transform_0, window_bounds = array<i64: 8, 256>}, {transform_indices = @transform_1, window_bounds = array<i64: 8, 256>}, {transform_indices = @transform_2, window_bounds = array<i64: 8, 256>}]} {
    %c0 = arith.constant 0 : index
    %c0_0 = arith.constant 0 : index
    %0 = vector.load %arg1[%c0, %c0_0] : memref<8x256xf32, #tpu.memory_space<vmem>>, vector<8x256xf32>
    %cst = arith.constant dense<0.000000e+00> : vector<8xf32>
    %1 = vector.multi_reduction <add>, %0, %cst [1] : vector<8x256xf32> to vector<8xf32>
    %2 = vector.shape_cast %1 : vector<8xf32> to vector<8x1xf32>
    %3 = arith.mulf %0, %0 : vector<8x256xf32>
    %cst_1 = arith.constant dense<0.000000e+00> : vector<8xf32>
    %4 = vector.multi_reduction <add>, %3, %cst_1 [1] : vector<8x256xf32> to vector<8xf32>
    %5 = vector.shape_cast %4 : vector<8xf32> to vector<8x1xf32>
    %6 = arith.mulf %2, %2 : vector<8x1xf32>
    %cst_2 = arith.constant 3.906250e-03 : f32
    %7 = vector.broadcast %cst_2 : f32 to vector<8x1xf32>
    %8 = arith.mulf %6, %7 : vector<8x1xf32>
    %9 = arith.subf %5, %8 : vector<8x1xf32>
    %cst_3 = arith.constant 0.00392156886 : f32
    %10 = vector.broadcast %cst_3 : f32 to vector<8x1xf32>
    %11 = arith.mulf %9, %10 : vector<8x1xf32>
    %cst_4 = arith.constant 0.000000e+00 : f32
    %12 = vector.broadcast %cst_4 : f32 to vector<8x1xf32>
    %13 = arith.maximumf %11, %12 : vector<8x1xf32>
    %14 = math.sqrt %13 : vector<8x1xf32>
    %cst_5 = arith.constant 0.316227764 : f32
    %15 = vector.broadcast %cst_5 : f32 to vector<8x1xf32>
    %16 = arith.mulf %14, %15 : vector<8x1xf32>
    %c0_6 = arith.constant 0 : index
    %c0_7 = arith.constant 0 : index
    %17 = vector.load %arg2[%c0_6, %c0_7] : memref<8x256xf32, #tpu.memory_space<vmem>>, vector<8x256xf32>
    %18 = vector.broadcast %16 : vector<8x1xf32> to vector<8x256xf32>
    %19 = arith.mulf %18, %17 : vector<8x256xf32>
    %20 = arith.addf %0, %19 : vector<8x256xf32>
    %c0_8 = arith.constant 0 : index
    %c0_9 = arith.constant 0 : index
    %21 = vector.load %arg3[%c0_8, %c0_9] : memref<8x256xf32, #tpu.memory_space<vmem>>, vector<8x256xf32>
    tpu.vector_store %arg3[%c0_8, %c0_9], %20 {strides = array<i32>} : memref<8x256xf32, #tpu.memory_space<vmem>>, vector<8x256xf32>,
    return
  }
  func.func @transform_0(%arg0: i32) -> (i32, i32) {
    %c0_i32 = arith.constant 0 : i32
    %c0_i32_0 = arith.constant 0 : i32
    return %arg0, %c0_i32 : i32, i32
  }
  func.func @transform_1(%arg0: i32) -> (i32, i32) {
    %c0_i32 = arith.constant 0 : i32
    %c0_i32_0 = arith.constant 0 : i32
    return %arg0, %c0_i32 : i32, i32
  }
  func.func @transform_2(%arg0: i32) -> (i32, i32) {
    %c0_i32 = arith.constant 0 : i32
    %c0_i32_0 = arith.constant 0 : i32
    return %arg0, %c0_i32 : i32, i32
  }
}

</mosaic_0001>

<bundles_post_ra>
// kernel: tpu_custom_call.1
= control target key start
LH: loop header
LB: loop body
LE: loop exit
PB: predicated region body
PF: predicated region fallthrough
CT: control target
= control target key end

     0   :  { %7 = vsyncpa [#allocation3], 0  ;;  %s204_s0 = inlined_call_operand.hbm [shape: f32[8,256], index: 0, kind: input, shape index: {}]   ;;  %s205_s1 = inlined_call_operand.hbm [shape: f32[8,256], index: 1, kind: input, shape index: {}]   ;;  %s206_s2 = inlined_call_operand.hbm [shape: f32[8,256], index: 2, kind: output, shape index: {}]  }
   0x1   :  { %8 = vsyncpa [#allocation6], 0 }
   0x2   :  { %9 = vsyncpa [#allocation4], 0  ;;  %s15_s11 = sshll.u32 %s204_s0, 4  ;;  %s177_s12 = smov [#allocation2]   ;;  %s16_s11 = int_to_ptr.hbm [resolvable:$true] %s15_s11 }
   0x3   :  { %s17_s13 = sshll.u32 %s177_s12, 4  ;;  %s26_s16 = sshll.u32 %s205_s1, 4  ;;  %s18_s13 = int_to_ptr.vmem [resolvable:$true] %s17_s13  ;;  %s27_s16 = int_to_ptr.hbm [resolvable:$true] %s26_s16 }
   0x4   :  { %20 = dma.hbm_to_vmem [thread:$0]  %s16_s11, 256, %s18_s13, [#allocation3]  }
   0x5   :  { %s178_s17 = smov [#allocation5]  }
   0x6   :  { %s28_s18 = sshll.u32 %s178_s17, 4  ;;  %s29_s18 = int_to_ptr.vmem [resolvable:$true] %s28_s18 }
   0x7   :  { %31 = dma.hbm_to_vmem [thread:$0]  %s27_s16, 256, %s29_s18, [#allocation6]  }
   0x8   :  { %171 = dma.done.wait [#allocation3], 256  }
   0x9   :  { %172 = vsyncadd [#allocation3], 4294967040 }
   0xa   :  { %173 = dma.done.wait [#allocation6], 256  }
   0xb   :  { %174 = vsyncadd [#allocation6], 4294967040  ;;  %v40_v0 = vld [vmem:[#allocation2] sm:$0xff]  ;;  %v41_v1 = vld [vmem:[#allocation2 + $0x8] sm:$0xff]  ;;  %s179_s0 = smov [#allocation7]   ;;  %s83_s21 = sshll.u32 %s206_s2, 4  ;;  %s84_s21 = int_to_ptr.hbm [resolvable:$true] %s83_s21 }
   0xc   :  { %v42_v2 = vadd.f32 %v41_v1, %v40_v0  ;;  %v45_v3 = vmul.f32 %v40_v0, %v40_v0  ;;  %v46_v4 = vmul.f32 %v41_v1, %v41_v1  ;;  %v68_v23 = vld [vmem:[#allocation5] sm:$0xff]  ;;  %v69_v24 = vld [vmem:[#allocation5 + $0x8] sm:$0xff]  ;;  %s81_s1 = sshll.u32 %s179_s0, 4  ;;  %s82_s1 = int_to_ptr.vmem [resolvable:$true] %s81_s1 }
   0xe   :  { %43 = vadd.xlane.f32.xlu0 %v42_v2  ;;  %v47_v5 = vadd.f32 %v46_v4, %v45_v3 }
  0x16   :  { %48 = vadd.xlane.f32.xlu0 %v47_v5 }
  0x81   :  { %v44_v6 = vpop.xlane.xlu0 %43 }
  0x82   :  { %v50_v7 = vmul.f32 %v44_v6, %v44_v6 }
  0x84   :  { %v51_v8 = vmul.f32 0.00390625, %v50_v7 }
  0x89   :  { %v49_v9 = vpop.xlane.xlu0 %48 }
  0x8a   :  { %v52_v10 = vsub.f32 %v49_v9, %v51_v8 }
  0x8c   :  { %v53_v11 = vmul.f32 0.003921569, %v52_v10 }
  0x8e   :  { %v54_v12 = vmax.f32 %v53_v11, 0.0 }
  0x90   :  { %97 = vrsqrt.f32 %v54_v12  ;;  %vm62_vm0 = vcmp.eq.f32.partialorder %v54_v12, inf  ;;  %v65_v20 = vand.u32 2147483648, %v54_v12  ;;  %vm64_vm1 = vcmp.eq.f32.partialorder %v54_v12, 0.0 }
  0x96   :  { %v98_v13 = vpop.eup %97 }
  0x97   :  { %v56_v14 = vmul.f32 %v98_v13, %v54_v12 }
  0x99   :  { %v57_v15 = vmul.f32 %v98_v13, %v56_v14 }
  0x9b   :  { %v58_v16 = vmul.f32 0.5, %v57_v15 }
  0x9d   :  { %v59_v17 = vsub.f32 1.5, %v58_v16 }
  0x9f   :  { %v60_v18 = vmul.f32 %v98_v13, %v59_v17 }
  0xa1   :  { %v61_v19 = vmul.f32 %v60_v18, %v54_v12 }
  0xa3   :  { %v63_v21 = vsel %vm62_vm0, %v54_v12, %v61_v19 }
  0xa4   :  { %v66_v22 = vsel %vm64_vm1, %v65_v20, %v63_v21 }
  0xa5   :  { %v67_v25 = vmul.f32 0.31622776, %v66_v22 }
  0xa7   :  { %v70_v26 = vmul.f32 %v68_v23, %v67_v25  ;;  %v71_v27 = vmul.f32 %v69_v24, %v67_v25 }
  0xa9   :  { %v72_v28 = vadd.f32 %v70_v26, %v40_v0  ;;  %v73_v29 = vadd.f32 %v71_v27, %v41_v1 }
  0xab   :  { %74 = vst [vmem:[#allocation7] sm:$0xff] %v72_v28 }
  0xac   :  { %75 = vst [vmem:[#allocation7 + $0x8] sm:$0xff] %v73_v29 }
  0xad   :  { %86 = dma.vmem_to_hbm [thread:$0]  %s82_s1, 256, %s84_s21, [#allocation4]  }
  0xae   :  { %175 = dma.done.wait [#allocation4], 256  }
  0xaf   :  { %176 = vsyncadd [#allocation4], 4294967040 }
  0xb0   :  { %91 = vsyncpa [#allocation3], 1 }
  0xb1   :  { %92 = vsyncpa [#allocation6], 1 }
  0xb2   :  { %93 = vsyncpa [#allocation4], 1 }

</bundles_post_ra>
